<compile_context>
chip_gen: v5e
topology: v5e:2x2
jax: 0.10.0
libtpu: 0.0.40
codegen_flags: <defaults>
</compile_context>

<pallas_src>
from functools import partial

import jax
import jax.numpy as jnp
from jax.experimental import pallas as pl
from jax.experimental.pallas import tpu as pltpu


# ----------------------------------------------------------------------------
# Pallas kernel: dropout (precomputed keep-mask) + all A Linear heads at once.
# Shapes seen by the kernel:
#   x_ref: (A, Bt, D) f32      m_ref: (A, Bt, D) bf16 (values 0 or 1/(1-p))
#   w_ref: (A, D, Op) bf16     b_ref: (A, 1, Op) f32
#   o_ref: (A, Bt, Op) f32
# ----------------------------------------------------------------------------
def _attr_classifier_kernel(x_ref, m_ref, w_ref, b_ref, o_ref):
    # Dropout in f32 (mask values 0.0 / 1.25 are exact in bf16 and f32).
    x = x_ref[...].astype(jnp.float32) * m_ref[...].astype(jnp.float32)
    # Batched matmul over the attribute axis on the MXU, bf16 in / f32 accumulate.
    logits = jnp.einsum(
        "abd,ado->abo",
        x.astype(jnp.bfloat16),
        w_ref[...],
        preferred_element_type=jnp.float32,
    )
    o_ref[...] = (logits + b_ref[...]).astype(o_ref.dtype)


def _pick_b_tile(B):
    # Cap the batch tile at 512 rows (fits v5e's 16 MiB scoped-VMEM default with
    # D=768 f32 double-buffered); fall back to full B for small / ragged batches.
    for t in (512, 256, 128):
        if B % t == 0:
            return t
    return B


def _build_pallas_logits(A, B, D, Op, Bt):
    nb = B // Bt
    grid_spec = pltpu.PrefetchScalarGridSpec(
        num_scalar_prefetch=0,
        grid=(nb,),
        in_specs=[
            pl.BlockSpec((A, Bt, D), lambda j: (0, j, 0)),   # x
            pl.BlockSpec((A, Bt, D), lambda j: (0, j, 0)),   # dropout keep-mask
            pl.BlockSpec((A, D, Op), lambda j: (0, 0, 0)),   # W^T (bf16, resident)
            pl.BlockSpec((A, 1, Op), lambda j: (0, 0, 0)),   # bias (resident)
        ],
        out_specs=pl.BlockSpec((A, Bt, Op), lambda j: (0, j, 0)),
    )
    return pl.pallas_call(
        _attr_classifier_kernel,
        out_shape=jax.ShapeDtypeStruct((A, B, Op), jnp.float32),
        grid_spec=grid_spec,
        compiler_params=pltpu.CompilerParams(
            dimension_semantics=("parallel",),   # B-tiles are independent (v7x 2xTC)
        ),
    )


def attribute_classifier7ind_forward(x_stack, w_pad, b_pad, out_dims,
                                     *, training, dropout_key=None, dropout_p=0.2):
    """x_stack: (A, B, D) f32; w_pad: (A, D, Op) bf16; b_pad: (A, 1, Op) f32."""
    A, B, D = x_stack.shape

    if not training:
        # PyTorch eval forward returns torch.cat(x, dim=1) and discards the logits:
        # skip the kernel entirely; single transpose+reshape instead of A-way concat.
        return jnp.transpose(x_stack, (1, 0, 2)).reshape(B, A * D)

    if dropout_key is None:
        raise ValueError("training=True requires a dropout_key")

    # Host/XLA-side dropout mask (values 0 or 1/(1-p); both exact in bf16).
    # TODO(synk): switch to in-kernel pltpu.prng_random_bits once interpret-mode
    # lowering for the TPU PRNG primitives is available.
    keep = jax.random.bernoulli(dropout_key, p=1.0 - dropout_p, shape=x_stack.shape)
    mask = jnp.where(keep, 1.0 / (1.0 - dropout_p), 0.0).astype(jnp.bfloat16)

    Op = w_pad.shape[-1]
    Bt = _pick_b_tile(B)
    call = _build_pallas_logits(A, B, D, Op, Bt)
    logits_padded = call(x_stack, mask, w_pad, b_pad)

    return [logits_padded[i, :, :out_dims[i]] for i in range(A)]


# ----------------------------------------------------------------------------
# Parameter construction mirroring __init__: one Linear(in_dim, len(v)+1) per
# attribute, trunc_normal_(std=0.02, a=-2, b=2) weights (absolute bounds -> the
# truncation is at +-100 sigma, i.e. effectively a plain normal), zero bias.
# ----------------------------------------------------------------------------
def _round_up(n, m):
    return ((n + m - 1) // m) * m


def init_params(key, dict_attribute, in_dim):
    out_dims = [len(v) + 1 for v in dict_attribute.values()]
    A = len(out_dims)
    Op = _round_up(max(out_dims), 128)          # lane-dense padded output width
    std = 0.02
    w_pad = jnp.zeros((A, in_dim, Op), jnp.float32)
    b_pad = jnp.zeros((A, 1, Op), jnp.float32)  # nn.init.constant_(bias, 0)
    for i, od in enumerate(out_dims):
        key, sub = jax.random.split(key)
        # absolute bounds a=-2, b=2 expressed in units of sigma for jax's API
        w = std * jax.random.truncated_normal(
            sub, -2.0 / std, 2.0 / std, (od, in_dim), jnp.float32)
        w_pad = w_pad.at[i, :, :od].set(w.T)
    return w_pad.astype(jnp.bfloat16), b_pad, out_dims


if __name__ == "__main__":
    dict_attribute = {
        "color": ["red", "green", "blue"],                    # -> Linear(in_dim, 4)
        "shape": ["circle", "square", "tri", "star", "hex"],  # -> Linear(in_dim, 6)
        "size":  ["small", "big"],                            # -> Linear(in_dim, 3)
    }
    in_dim = 32
    batch = 4
    A = len(dict_attribute)
    dropout_p = 0.2

    root = jax.random.PRNGKey(0)
    k_param, k_x, k_drop = jax.random.split(root, 3)
    w_pad, b_pad, out_dims = init_params(k_param, dict_attribute, in_dim)

    # x is a list of A tensors of shape (batch, in_dim) -> stacked (A, B, D)
    x_stack = jax.random.normal(k_x, (A, batch, in_dim), jnp.float32)

    # --- training mode: dropout + per-attribute Linear fused in one Pallas call
    probs = attribute_classifier7ind_forward(
        x_stack, w_pad, b_pad, out_dims,
        training=True, dropout_key=k_drop, dropout_p=dropout_p)
    probs = [jax.block_until_ready(p) for p in probs]
    assert [p.shape for p in probs] == [(batch, od) for od in out_dims]

    # reference check (same mask, f32 math; tolerance covers bf16 matmul inputs)
    keep = jax.random.bernoulli(k_drop, p=1.0 - dropout_p, shape=x_stack.shape)
    xd = jnp.where(keep, x_stack, 0.0) * (1.0 / (1.0 - dropout_p))
    for i, od in enumerate(out_dims):
        ref = xd[i] @ w_pad[i, :, :od].astype(jnp.float32) + b_pad[i, :, :od]
        assert jnp.allclose(probs[i], ref, atol=2e-2), f"mismatch on attribute {i}"

    # --- eval mode: PyTorch forward returns torch.cat(x, dim=1); no kernel launch
    eval_out = attribute_classifier7ind_forward(
        x_stack, w_pad, b_pad, out_dims, training=False)
    eval_out = jax.block_until_ready(eval_out)
    assert eval_out.shape == (batch, A * in_dim)
    ref_cat = jnp.concatenate([x_stack[i] for i in range(A)], axis=1)
    assert jnp.array_equal(eval_out, ref_cat)

    print("KERNEL_OK")
</pallas_src>

<mosaic_0001>
module attributes {stable_mosaic.version = 11 : i64} {
  func.func @_attr_classifier_kernel(%arg0: i32, %arg1: memref<3x4x32xf32, #tpu.memory_space<vmem>>, %arg2: memref<3x4x32xbf16, #tpu.memory_space<vmem>>, %arg3: memref<3x32x128xbf16, #tpu.memory_space<vmem>>, %arg4: memref<3x1x128xf32, #tpu.memory_space<vmem>>, %arg5: memref<3x4x128xf32, #tpu.memory_space<vmem>>) attributes {dimension_semantics = [#tpu.dimension_semantics<parallel>], iteration_bounds = array<i64: 1>, scalar_prefetch = 0 : i64, scratch_operands = 0 : i64, tpu.core_type = #tpu.core_type<tc>, window_params = [{transform_indices = @transform_0, window_bounds = array<i64: 3, 4, 32>}, {transform_indices = @transform_1, window_bounds = array<i64: 3, 4, 32>}, {pipeline_mode = #tpu.pipeline_mode<synchronous>, transform_indices = @transform_2, window_bounds = array<i64: 3, 32, 128>}, {pipeline_mode = #tpu.pipeline_mode<synchronous>, transform_indices = @transform_3, window_bounds = array<i64: 3, 1, 128>}, {transform_indices = @transform_4, window_bounds = array<i64: 3, 4, 128>}]} {
    %c0 = arith.constant 0 : index
    %c0_0 = arith.constant 0 : index
    %c0_1 = arith.constant 0 : index
    %0 = vector.load %arg1[%c0, %c0_0, %c0_1] : memref<3x4x32xf32, #tpu.memory_space<vmem>>, vector<3x4x32xf32>
    %c0_2 = arith.constant 0 : index
    %c0_3 = arith.constant 0 : index
    %c0_4 = arith.constant 0 : index
    %1 = vector.load %arg2[%c0_2, %c0_3, %c0_4] : memref<3x4x32xbf16, #tpu.memory_space<vmem>>, vector<3x4x32xbf16>
    %2 = arith.extf %1 : vector<3x4x32xbf16> to vector<3x4x32xf32>
    %3 = arith.mulf %0, %2 : vector<3x4x32xf32>
    %4 = arith.truncf %3 : vector<3x4x32xf32> to vector<3x4x32xbf16>
    %c0_5 = arith.constant 0 : index
    %c0_6 = arith.constant 0 : index
    %c0_7 = arith.constant 0 : index
    %5 = vector.load %arg3[%c0_5, %c0_6, %c0_7] : memref<3x32x128xbf16, #tpu.memory_space<vmem>>, vector<3x32x128xbf16>
    "tpu.trace_start"() <{level = 10 : i32, message = "abd,ado->abo"}> : () -> ()
    %cst = arith.constant dense<0.000000e+00> : vector<3x4x128xf32>
    %6 = tpu.matmul %4, %5, %cst {dimension_numbers = #tpu.dot_dimension_numbers<[2], [1], [1], [2], [0, 0, 0, 1, 1, 2], [0], [0]>} : vector<3x4x32xbf16>, vector<3x32x128xbf16>, vector<3x4x128xf32> -> vector<3x4x128xf32>
    "tpu.trace_stop"() : () -> ()
    %c0_8 = arith.constant 0 : index
    %c0_9 = arith.constant 0 : index
    %c0_10 = arith.constant 0 : index
    %7 = vector.load %arg4[%c0_8, %c0_9, %c0_10] : memref<3x1x128xf32, #tpu.memory_space<vmem>>, vector<3x1x128xf32>
    %8 = vector.broadcast %7 : vector<3x1x128xf32> to vector<3x4x128xf32>
    %9 = arith.addf %6, %8 : vector<3x4x128xf32>
    %c0_11 = arith.constant 0 : index
    %c0_12 = arith.constant 0 : index
    %c0_13 = arith.constant 0 : index
    %10 = vector.load %arg5[%c0_11, %c0_12, %c0_13] : memref<3x4x128xf32, #tpu.memory_space<vmem>>, vector<3x4x128xf32>
    tpu.vector_store %arg5[%c0_11, %c0_12, %c0_13], %9 {strides = array<i32>} : memref<3x4x128xf32, #tpu.memory_space<vmem>>, vector<3x4x128xf32>,
    return
  }
  func.func @transform_0(%arg0: i32) -> (i32, i32, i32) {
    %c0_i32 = arith.constant 0 : i32
    %c0_i32_0 = arith.constant 0 : i32
    %c0_i32_1 = arith.constant 0 : i32
    return %c0_i32, %arg0, %c0_i32_0 : i32, i32, i32
  }
  func.func @transform_1(%arg0: i32) -> (i32, i32, i32) {
    %c0_i32 = arith.constant 0 : i32
    %c0_i32_0 = arith.constant 0 : i32
    %c0_i32_1 = arith.constant 0 : i32
    return %c0_i32, %arg0, %c0_i32_0 : i32, i32, i32
  }
  func.func @transform_2(%arg0: i32) -> (i32, i32, i32) {
    %c0_i32 = arith.constant 0 : i32
    %c0_i32_0 = arith.constant 0 : i32
    %c0_i32_1 = arith.constant 0 : i32
    %c0_i32_2 = arith.constant 0 : i32
    return %c0_i32, %c0_i32_0, %c0_i32_1 : i32, i32, i32
  }
  func.func @transform_3(%arg0: i32) -> (i32, i32, i32) {
    %c0_i32 = arith.constant 0 : i32
    %c0_i32_0 = arith.constant 0 : i32
    %c0_i32_1 = arith.constant 0 : i32
    %c0_i32_2 = arith.constant 0 : i32
    return %c0_i32, %c0_i32_0, %c0_i32_1 : i32, i32, i32
  }
  func.func @transform_4(%arg0: i32) -> (i32, i32, i32) {
    %c0_i32 = arith.constant 0 : i32
    %c0_i32_0 = arith.constant 0 : i32
    %c0_i32_1 = arith.constant 0 : i32
    return %c0_i32, %arg0, %c0_i32_0 : i32, i32, i32
  }
}

</mosaic_0001>

<bundles_post_ra>
// kernel: tpu_custom_call.1
= control target key start
LH: loop header
LB: loop body
LE: loop exit
PB: predicated region body
PF: predicated region fallthrough
CT: control target
= control target key end

     0   :  { %9 = vsyncpa [#allocation3], 0  ;;  %s465_s0 = inlined_call_operand.hbm [shape: f32[3,4,32], index: 0, kind: input, shape index: {}]   ;;  %s466_s1 = inlined_call_operand.hbm [shape: bf16[3,4,32], index: 1, kind: input, shape index: {}]   ;;  %s467_s2 = inlined_call_operand.hbm [shape: bf16[3,32,128], index: 2, kind: input, shape index: {}]   ;;  %s468_s3 = inlined_call_operand.hbm [shape: f32[3,1,128], index: 3, kind: input, shape index: {}]   ;;  %s469_s4 = inlined_call_operand.hbm [shape: f32[3,4,128], index: 4, kind: output, shape index: {}]  }
   0x1   :  { %10 = vsyncpa [#allocation6], 0 }
   0x2   :  { %11 = vsyncpa [#allocation9], 0  ;;  %s30_s17 = sshll.u32 %s466_s1, 4  ;;  %s31_s17 = int_to_ptr.hbm [resolvable:$true] %s30_s17 }
   0x3   :  { %12 = vsyncpa [#allocation4], 0  ;;  %s405_s18 = smov [#allocation5]   ;;  %s17_s22 = sshll.u32 %s465_s0, 4  ;;  %s18_s22 = int_to_ptr.hbm [resolvable:$true] %s17_s22 }
   0x4   :  { %s32_s19 = sshll.u32 %s405_s18, 4  ;;  %s406_s23 = smov 32   ;;  %s33_s19 = int_to_ptr.vmem [resolvable:$true] %s32_s19 }
   0x5   :  { %s407_s24 = smov 2   ;;  %s408_s25 = smov [#allocation2]  }
   0x6   :  { %38 = dma.hbm_to_vmem [thread:$0]  %s31_s17, 96, %s33_s19, [#allocation6], %s406_s23, %s406_s23, %s407_s24  }
   0x7   :  { %s19_s26 = sshll.u32 %s408_s25, 4  ;;  %s409_s27 = smov 64   ;;  %s20_s26 = int_to_ptr.vmem [resolvable:$true] %s19_s26 }
   0x8   :  { %s410_s28 = smov 4   ;;  %s43_s30 = sshll.u32 %s467_s2, 4  ;;  %s44_s30 = int_to_ptr.hbm [resolvable:$true] %s43_s30 }
   0x9   :  { %25 = dma.hbm_to_vmem [thread:$0]  %s18_s22, 192, %s20_s26, [#allocation3], %s409_s27, %s409_s27, %s410_s28  }
   0xa   :  { %s411_s5 = smov [#allocation7]   ;;  %s56_s8 = sshll.u32 %s468_s3, 4  ;;  %s57_s8 = int_to_ptr.hbm [resolvable:$true] %s56_s8 }
   0xb   :  { %s45_s0 = sshll.u32 %s411_s5, 4  ;;  %s412_s9 = smov [#allocation8]   ;;  %s46_s0 = int_to_ptr.vmem [resolvable:$true] %s45_s0 }
   0xc   :  { %51 = dma.hbm_to_vmem [thread:$0]  %s44_s30, 768, %s46_s0, [#allocation6], %s409_s27, %s409_s27, %s410_s28  }
   0xd   :  { %s58_s10 = sshll.u32 %s412_s9, 4  ;;  %s413_s11 = smov 16   ;;  %s59_s10 = int_to_ptr.vmem [resolvable:$true] %s58_s10 }
   0xe   :  { %s414_s12 = smov 1  }
   0xf   :  { %64 = dma.hbm_to_vmem [thread:$0]  %s57_s8, 48, %s59_s10, [#allocation9], %s413_s11, %s413_s11, %s414_s12  }
  0x10   :  { %397 = dma.done.wait [#allocation3], 192  }
  0x11   :  { %398 = vsyncadd [#allocation3], 4294967104 }
  0x12   :  { %399 = dma.done.wait [#allocation6], 864  }
  0x13   :  { %400 = vsyncadd [#allocation6], 4294966432 }
  0x14   :  { %401 = dma.done.wait [#allocation9], 48  }
  0x15   :  { %402 = vsyncadd [#allocation9], 4294967248  ;;  %v258_v0 = vld [vmem:[#allocation7 + $0x8] sm:$0xff]  ;;  %v260_v1 = vld [vmem:[#allocation7 + $0x18] sm:$0xff]  ;;  %vm133_vm0 = vcmask 261120   ;;  %s415_s2 = smov [#allocation10]  }
  0x16   :  { %v262_v2 = vld [vmem:[#allocation7 + $0x28] sm:$0xff]  ;;  %v257_v3 = vld [vmem:[#allocation7] sm:$0xff]  ;;  %v259_v4 = vld [vmem:[#allocation7 + $0x10] sm:$0xff]  ;;  %143 = vmatpush.bf16.msra.mxu0 %v258_v0  ;;  %171 = vmatpush.bf16.msra.mxu1 %v260_v1  ;;  %s213_s3 = sshll.u32 %s415_s2, 4  ;;  %s215_s15 = sshll.u32 %s469_s4, 4  ;;  %s214_s3 = int_to_ptr.vmem [resolvable:$true] %s213_s3  ;;  %s216_s15 = int_to_ptr.hbm [resolvable:$true] %s215_s15 }
  0x17   :  { %v261_v5 = vld [vmem:[#allocation7 + $0x20] sm:$0xff]  ;;  %v82_v6 = vld [vmem:[#allocation2] sm:$0xf]  ;;  %v85_v7 = vld [vmem:[#allocation5] sm:$0x3]  ;;  %199 = vmatpush.bf16.msra.mxu2 %v262_v2 }
  0x18   :  { %v83_v8 = vld [vmem:[#allocation2 + $0x4] sm:$0xf]  ;;  %v88_v9 = vunpack.c.l.bf16 %v85_v7  ;;  %v86_v10 = vld [vmem:[#allocation5 + $0x2] sm:$0x3]  ;;  %v84_v11 = vld [vmem:[#allocation2 + $0x8] sm:$0xf] }
  0x19   :  { %v87_v12 = vld [vmem:[#allocation5 + $0x4] sm:$0x3]  ;;  %v89_v13 = vunpack.c.l.bf16 %v86_v10  ;;  %v274_v21 = vld [vmem:[#allocation8] ss:$0 sm:$0xff]  ;;  %v275_v22 = vld [vmem:[#allocation8 + $0x1] ss:$0 sm:$0xff] }
  0x1a   :  { %v90_v14 = vunpack.c.l.bf16 %v87_v12  ;;  %v91_v15 = vmul.f32 %v88_v9, %v82_v6  ;;  %144 = vmatpush.bf16.msra.mxu0 %v257_v3  ;;  %172 = vmatpush.bf16.msra.mxu1 %v259_v4  ;;  %v276_v27 = vld [vmem:[#allocation8 + $0x2] ss:$0 sm:$0xff] }
  0x1b   :  { %v92_v16 = vmul.f32 %v89_v13, %v83_v8  ;;  %200 = vmatpush.bf16.msra.mxu2 %v261_v5 }
  0x1c   :  { %v93_v17 = vmul.f32 %v90_v14, %v84_v11  ;;  %v94_v18 = vpack.c.bf16 %v91_v15, %v91_v15 }
  0x1d   :  { %v95_v19 = vpack.c.bf16 %v92_v16, %v92_v16 }
  0x1e   :  { %v96_v20 = vpack.c.bf16 %v93_v17, %v93_v17  ;;  %238 = vmatmul.msk.bf16.vlgmr.msra.gmra.mxu0 %vm133_vm0, %v94_v18 }
  0x1f   :  { %247 = vmatmul.msk.bf16.vlgmr.msra.gmra.mxu1 %vm133_vm0, %v95_v19 }
  0x20   :  { %256 = vmatmul.msk.bf16.vlgmr.msra.gmra.mxu2 %vm133_vm0, %v96_v20 }
  0x9b   :  { %v146_v23 = vpop.f32.mrf.mxu0 }
  0x9c   :  { %v147_v24 = vadd.f32 %v274_v21, %v146_v23  ;;  %v174_v25 = vpop.f32.mrf.mxu1 }
  0x9d   :  { %v175_v26 = vadd.f32 %v275_v22, %v174_v25 }
  0x9e   :  { %206 = vst [vmem:[#allocation10] sm:$0xf] %v147_v24 }
  0x9f   :  { %207 = vst [vmem:[#allocation10 + $0x4] sm:$0xf] %v175_v26 }
  0xa3   :  { %v202_v28 = vpop.f32.mrf.mxu2  ;;  %v148_v30 = vpop.f32.mrf.mxu0 }
  0xa4   :  { %v203_v29 = vadd.f32 %v276_v27, %v202_v28  ;;  %v176_v31 = vpop.f32.mrf.mxu1 }
  0xa6   :  { %208 = vst [vmem:[#allocation10 + $0x8] sm:$0xf] %v203_v29 }
  0xa7   :  { %221 = dma.vmem_to_hbm [thread:$0]  %s214_s3, 192, %s216_s15, [#allocation4], %s409_s27, %s409_s27, %s410_s28  }
  0xab   :  { %v204_v32 = vpop.f32.mrf.mxu2 }
  0xac   :  { %403 = dma.done.wait [#allocation4], 192  }
  0xad   :  { %404 = vsyncadd [#allocation4], 4294967104 }
  0xae   :  { %226 = vsyncpa [#allocation3], 1 }
  0xaf   :  { %227 = vsyncpa [#allocation6], 1 }
  0xb0   :  { %228 = vsyncpa [#allocation9], 1 }
  0xb1   :  { %229 = vsyncpa [#allocation4], 1 }

</bundles_post_ra>
